<compile_context>
chip_gen: v6e
topology: v6e:2x2x1
jax: 0.10.0
libtpu: 0.0.40
codegen_flags: <defaults>
</compile_context>

<pallas_src>
import jax
import jax.numpy as jnp
from jax import lax
from jax.experimental import pallas as pl
from jax.experimental.pallas import tpu as pltpu

HID = 256          # hidden width of each MLP critic
_TILE_B_MAX = 512  # batch tile when the batch is large


def _twin_critics_kernel(x_ref, w1_ref, b1_ref, w2_ref, b2_ref, w3_ref, b3_ref,
                         q_ref):
    """Both critics over one batch tile.  q_ref is lane-dense: (2, tile_b)."""
    x = x_ref[...]                                          # (tile_b, d_in) bf16

    # Layer 1, both critics fused: one (d_in -> 2*HID) MXU matmul, f32 accumulation,
    # f32 bias-add + ReLU.
    h1 = jnp.dot(x, w1_ref[...], preferred_element_type=jnp.float32)
    h1 = jnp.maximum(h1 + b1_ref[...], 0.0)                 # (tile_b, 2*HID) f32

    w3 = w3_ref[...]                                        # (2, HID) bf16

    def head(c):
        # Layer 2 for critic c (c is a static Python int).
        h1_c = h1[:, c * HID:(c + 1) * HID].astype(jnp.bfloat16)
        h2 = jnp.dot(h1_c, w2_ref[c], preferred_element_type=jnp.float32)
        h2 = jnp.maximum(h2 + b2_ref[c:c + 1, :], 0.0).astype(jnp.bfloat16)
        # Layer 3 (256 -> 1) as a trans-B matmul: (1,HID) . (tile_b,HID)^T -> (1,tile_b)
        # so the result is already lane-dense (batch on lanes).
        q = lax.dot_general(w3[c:c + 1, :], h2,
                            dimension_numbers=(((1,), (1,)), ((), ())),
                            preferred_element_type=jnp.float32)
        return q + b3_ref[c]                                # scalar bias from SMEM

    q_ref[...] = jnp.concatenate([head(0), head(1)], axis=0).astype(q_ref.dtype)


def _round_up(x, m):
    return ((x + m - 1) // m) * m


def prepare_twin_params(params_a, params_b):
    """Pack/cast both critics' parameters ONCE (outside the hot forward path)."""
    w1a, b1a, w2a, b2a, w3a, b3a = params_a
    w1b, b1b, w2b, b2b, w3b, b3b = params_b
    w1 = jnp.concatenate([w1a, w1b], axis=1).astype(jnp.bfloat16)   # (d_in, 2*HID)
    b1 = jnp.concatenate([b1a, b1b], axis=1).astype(jnp.float32)    # (1, 2*HID)
    w2 = jnp.stack([w2a, w2b]).astype(jnp.bfloat16)                 # (2, HID, HID)
    b2 = jnp.concatenate([b2a, b2b], axis=0).astype(jnp.float32)    # (2, HID)
    w3 = jnp.stack([w3a[:, 0], w3b[:, 0]]).astype(jnp.bfloat16)     # (2, HID) row layout
    b3 = jnp.concatenate([b3a[0], b3b[0]]).astype(jnp.float32)      # (2,)
    return (w1, b1, w2, b2, w3, b3)


@jax.jit
def twin_critics_forward(x, packed_params):
    """x: [B, inp_dim + out_dim] float32.  Returns (qa, qb), each [B, 1] float32."""
    w1, b1, w2, b2, w3, b3 = packed_params
    B, d_in = x.shape

    if B <= _TILE_B_MAX:
        tile_b = _round_up(B, 16)     # bf16 sublane pack
        b_pad = tile_b
    else:
        tile_b = _TILE_B_MAX
        b_pad = _round_up(B, tile_b)
    n_btiles = b_pad // tile_b

    # bf16 activations for the matmuls (biases / accumulation stay f32).
    # TODO(synk): keep x in f32 for layer 1 if tighter parity with the f32 torch
    # reference is ever required (K=d_in is tiny, so the cost would be negligible).
    x_bf16 = x.astype(jnp.bfloat16)
    if b_pad != B:
        x_bf16 = jnp.pad(x_bf16, ((0, b_pad - B), (0, 0)))

    in_specs = [
        pl.BlockSpec((tile_b, d_in), lambda i: (i, 0)),        # x batch tile (pipelined)
        pl.BlockSpec((d_in, 2 * HID), lambda i: (0, 0)),       # w1 fused (VMEM-resident)
        pl.BlockSpec((1, 2 * HID), lambda i: (0, 0)),          # b1
        pl.BlockSpec((2, HID, HID), lambda i: (0, 0, 0)),      # w2 stacked
        pl.BlockSpec((2, HID), lambda i: (0, 0)),              # b2
        pl.BlockSpec((2, HID), lambda i: (0, 0)),              # w3 (row layout)
        pl.BlockSpec(memory_space=pltpu.MemorySpace.SMEM),     # b3 scalars
    ]
    out_specs = pl.BlockSpec((2, tile_b), lambda i: (0, i))    # lane-dense q rows
    out_shape = jax.ShapeDtypeStruct((2, b_pad), jnp.float32)

    flops = 2 * b_pad * (d_in * 2 * HID + 2 * HID * HID + 2 * HID)
    bytes_accessed = (
        (d_in * 2 * HID + 2 * HID * HID + 2 * HID) * 2    # bf16 weights (read once)
        + (2 * HID + 2 * HID + 2) * 4                     # f32 biases
        + b_pad * d_in * 2                                # bf16 activations in
        + 2 * b_pad * 4                                   # f32 q out
    )

    q = pl.pallas_call(
        _twin_critics_kernel,
        out_shape=out_shape,
        grid=(n_btiles,),
        in_specs=in_specs,
        out_specs=out_specs,
        compiler_params=pltpu.CompilerParams(
            # Batch tiles are independent -> shards across the two TensorCores on v7x.
            dimension_semantics=("parallel",)),
        cost_estimate=pl.CostEstimate(
            flops=flops, transcendentals=0, bytes_accessed=bytes_accessed),
    )(x_bf16, w1, b1, w2, b2, w3, b3)

    return q[0, :B, None], q[1, :B, None]


def _init_linear(key, fan_in, fan_out):
    """PyTorch nn.Linear default init: U(-1/sqrt(fan_in), 1/sqrt(fan_in))."""
    kw, kb = jax.random.split(key)
    bound = 1.0 / jnp.sqrt(float(fan_in))
    # stored as [in, out] (transposed vs. torch's [out, in])
    w = jax.random.uniform(kw, (fan_in, fan_out), jnp.float32, -bound, bound)
    b = jax.random.uniform(kb, (1, fan_out), jnp.float32, -bound, bound)
    return w, b


def init_critic_params(key, inp_plus_out, hid=HID):
    k1, k2, k3 = jax.random.split(key, 3)
    w1, b1 = _init_linear(k1, inp_plus_out, hid)
    w2, b2 = _init_linear(k2, hid, hid)
    w3, b3 = _init_linear(k3, hid, 1)
    return (w1, b1, w2, b2, w3, b3)


def _reference_forward(x, params):
    w1, b1, w2, b2, w3, b3 = params
    h1 = jnp.maximum(x @ w1 + b1, 0.0)
    h2 = jnp.maximum(h1 @ w2 + b2, 0.0)
    return h2 @ w3 + b3


if __name__ == "__main__":
    key = jax.random.PRNGKey(0)
    k_x, k_a, k_b = jax.random.split(key, 3)

    # Critic(inp_dim, out_dim) -> MLP(inp_dim + out_dim, 1).
    inp_dim, out_dim = 16, 8
    batch = 8
    d_in = inp_dim + out_dim  # x is the already-concatenated (state, action)

    x = jax.random.normal(k_x, (batch, d_in), jnp.float32)
    params_a = init_critic_params(k_a, d_in, HID)
    params_b = init_critic_params(k_b, d_in, HID)

    # Pack/cast weights once, outside the hot forward path.
    packed = prepare_twin_params(params_a, params_b)

    qa, qb = twin_critics_forward(x, packed)
    qa, qb = jax.block_until_ready((qa, qb))

    # Sanity check against an f32 pure-JAX reference (kernel uses bf16 matmul
    # operands with f32 accumulation, so the tolerance is loosened accordingly).
    ref_a = _reference_forward(x, params_a)
    ref_b = _reference_forward(x, params_b)
    assert qa.shape == (batch, 1) and qb.shape == (batch, 1)
    assert jnp.allclose(qa, ref_a, atol=2e-2, rtol=2e-2)
    assert jnp.allclose(qb, ref_b, atol=2e-2, rtol=2e-2)

    print("KERNEL_OK")
</pallas_src>

<mosaic_0001>
module attributes {stable_mosaic.version = 11 : i64} {
  func.func @_twin_critics_kernel(%arg0: i32, %arg1: memref<16x24xbf16, #tpu.memory_space<vmem>>, %arg2: memref<24x512xbf16, #tpu.memory_space<vmem>>, %arg3: memref<1x512xf32, #tpu.memory_space<vmem>>, %arg4: memref<2x256x256xbf16, #tpu.memory_space<vmem>>, %arg5: memref<2x256xf32, #tpu.memory_space<vmem>>, %arg6: memref<2x256xbf16, #tpu.memory_space<vmem>>, %arg7: memref<2xf32, #tpu.memory_space<smem>>, %arg8: memref<2x16xf32, #tpu.memory_space<vmem>>) attributes {dimension_semantics = [#tpu.dimension_semantics<parallel>], iteration_bounds = array<i64: 1>, scalar_prefetch = 0 : i64, scratch_operands = 0 : i64, tpu.core_type = #tpu.core_type<tc>, window_params = [{transform_indices = @transform_0, window_bounds = array<i64: 16, 24>}, {pipeline_mode = #tpu.pipeline_mode<synchronous>, transform_indices = @transform_1, window_bounds = array<i64: 24, 512>}, {pipeline_mode = #tpu.pipeline_mode<synchronous>, transform_indices = @transform_2, window_bounds = array<i64: 1, 512>}, {pipeline_mode = #tpu.pipeline_mode<synchronous>, transform_indices = @transform_3, window_bounds = array<i64: 2, 256, 256>}, {pipeline_mode = #tpu.pipeline_mode<synchronous>, transform_indices = @transform_4, window_bounds = array<i64: 2, 256>}, {pipeline_mode = #tpu.pipeline_mode<synchronous>, transform_indices = @transform_5, window_bounds = array<i64: 2, 256>}, {transform_indices = @transform_6, window_bounds = array<i64: 2>}, {transform_indices = @transform_7, window_bounds = array<i64: 2, 16>}]} {
    %c0 = arith.constant 0 : index
    %c0_0 = arith.constant 0 : index
    %0 = vector.load %arg1[%c0, %c0_0] : memref<16x24xbf16, #tpu.memory_space<vmem>>, vector<16x24xbf16>
    %c0_1 = arith.constant 0 : index
    %c0_2 = arith.constant 0 : index
    %1 = vector.load %arg2[%c0_1, %c0_2] : memref<24x512xbf16, #tpu.memory_space<vmem>>, vector<24x512xbf16>
    %cst = arith.constant dense<0.000000e+00> : vector<16x512xf32>
    %2 = tpu.matmul %0, %1, %cst {dimension_numbers = #tpu.dot_dimension_numbers<[1], [0], [0], [1], [0, 0, 1, 1], [], []>} : vector<16x24xbf16>, vector<24x512xbf16>, vector<16x512xf32> -> vector<16x512xf32>
    %c0_3 = arith.constant 0 : index
    %c0_4 = arith.constant 0 : index
    %3 = vector.load %arg3[%c0_3, %c0_4] : memref<1x512xf32, #tpu.memory_space<vmem>>, vector<1x512xf32>
    %4 = vector.broadcast %3 : vector<1x512xf32> to vector<16x512xf32>
    %5 = arith.addf %2, %4 : vector<16x512xf32>
    %cst_5 = arith.constant 0.000000e+00 : f32
    %6 = vector.broadcast %cst_5 : f32 to vector<16x512xf32>
    %7 = arith.maximumf %5, %6 : vector<16x512xf32>
    %c0_6 = arith.constant 0 : index
    %c0_7 = arith.constant 0 : index
    %8 = vector.load %arg6[%c0_6, %c0_7] : memref<2x256xbf16, #tpu.memory_space<vmem>>, vector<2x256xbf16>
    %9 = vector.extract_strided_slice %7 {offsets = [0, 0], sizes = [16, 256], strides = [1, 1]} : vector<16x512xf32> to vector<16x256xf32>
    %10 = arith.truncf %9 : vector<16x256xf32> to vector<16x256xbf16>
    %c0_8 = arith.constant 0 : index
    %c0_9 = arith.constant 0 : index
    %c0_10 = arith.constant 0 : index
    %11 = vector.load %arg4[%c0_8, %c0_9, %c0_10] : memref<2x256x256xbf16, #tpu.memory_space<vmem>>, vector<1x256x256xbf16>
    %12 = vector.shape_cast %11 : vector<1x256x256xbf16> to vector<256x256xbf16>
    %cst_11 = arith.constant dense<0.000000e+00> : vector<16x256xf32>
    %13 = tpu.matmul %10, %12, %cst_11 {dimension_numbers = #tpu.dot_dimension_numbers<[1], [0], [0], [1], [0, 0, 1, 1], [], []>} : vector<16x256xbf16>, vector<256x256xbf16>, vector<16x256xf32> -> vector<16x256xf32>
    %c0_12 = arith.constant 0 : index
    %c0_13 = arith.constant 0 : index
    %14 = vector.load %arg5[%c0_12, %c0_13] : memref<2x256xf32, #tpu.memory_space<vmem>>, vector<1x256xf32>
    %15 = vector.broadcast %14 : vector<1x256xf32> to vector<16x256xf32>
    %16 = arith.addf %13, %15 : vector<16x256xf32>
    %cst_14 = arith.constant 0.000000e+00 : f32
    %17 = vector.broadcast %cst_14 : f32 to vector<16x256xf32>
    %18 = arith.maximumf %16, %17 : vector<16x256xf32>
    %19 = arith.truncf %18 : vector<16x256xf32> to vector<16x256xbf16>
    %20 = vector.extract_strided_slice %8 {offsets = [0, 0], sizes = [1, 256], strides = [1, 1]} : vector<2x256xbf16> to vector<1x256xbf16>
    %cst_15 = arith.constant dense<0.000000e+00> : vector<1x16xf32>
    %21 = tpu.matmul %20, %19, %cst_15 {dimension_numbers = #tpu.dot_dimension_numbers<[1], [1], [0], [0], [0, 0, 1, 0], [], []>} : vector<1x256xbf16>, vector<16x256xbf16>, vector<1x16xf32> -> vector<1x16xf32>
    %c0_16 = arith.constant 0 : index
    %22 = memref.load %arg7[%c0_16] : memref<2xf32, #tpu.memory_space<smem>>
    %23 = vector.broadcast %22 : f32 to vector<1x16xf32>
    %24 = arith.addf %21, %23 : vector<1x16xf32>
    %25 = vector.extract_strided_slice %7 {offsets = [0, 256], sizes = [16, 256], strides = [1, 1]} : vector<16x512xf32> to vector<16x256xf32>
    %26 = arith.truncf %25 : vector<16x256xf32> to vector<16x256xbf16>
    %c1 = arith.constant 1 : index
    %c0_17 = arith.constant 0 : index
    %c0_18 = arith.constant 0 : index
    %27 = vector.load %arg4[%c1, %c0_17, %c0_18] : memref<2x256x256xbf16, #tpu.memory_space<vmem>>, vector<1x256x256xbf16>
    %28 = vector.shape_cast %27 : vector<1x256x256xbf16> to vector<256x256xbf16>
    %cst_19 = arith.constant dense<0.000000e+00> : vector<16x256xf32>
    %29 = tpu.matmul %26, %28, %cst_19 {dimension_numbers = #tpu.dot_dimension_numbers<[1], [0], [0], [1], [0, 0, 1, 1], [], []>} : vector<16x256xbf16>, vector<256x256xbf16>, vector<16x256xf32> -> vector<16x256xf32>
    %c1_20 = arith.constant 1 : index
    %c0_21 = arith.constant 0 : index
    %30 = vector.load %arg5[%c1_20, %c0_21] : memref<2x256xf32, #tpu.memory_space<vmem>>, vector<1x256xf32>
    %31 = vector.broadcast %30 : vector<1x256xf32> to vector<16x256xf32>
    %32 = arith.addf %29, %31 : vector<16x256xf32>
    %cst_22 = arith.constant 0.000000e+00 : f32
    %33 = vector.broadcast %cst_22 : f32 to vector<16x256xf32>
    %34 = arith.maximumf %32, %33 : vector<16x256xf32>
    %35 = arith.truncf %34 : vector<16x256xf32> to vector<16x256xbf16>
    %36 = vector.extract_strided_slice %8 {offsets = [1, 0], sizes = [1, 256], strides = [1, 1]} : vector<2x256xbf16> to vector<1x256xbf16>
    %cst_23 = arith.constant dense<0.000000e+00> : vector<1x16xf32>
    %37 = tpu.matmul %36, %35, %cst_23 {dimension_numbers = #tpu.dot_dimension_numbers<[1], [1], [0], [0], [0, 0, 1, 0], [], []>} : vector<1x256xbf16>, vector<16x256xbf16>, vector<1x16xf32> -> vector<1x16xf32>
    %c1_24 = arith.constant 1 : index
    %38 = memref.load %arg7[%c1_24] : memref<2xf32, #tpu.memory_space<smem>>
    %39 = vector.broadcast %38 : f32 to vector<1x16xf32>
    %40 = arith.addf %37, %39 : vector<1x16xf32>
    %41 = tpu.concatenate %24, %40 in 0 : vector<1x16xf32>, vector<1x16xf32> -> vector<2x16xf32>
    %c0_25 = arith.constant 0 : index
    %c0_26 = arith.constant 0 : index
    %42 = vector.load %arg8[%c0_25, %c0_26] : memref<2x16xf32, #tpu.memory_space<vmem>>, vector<2x16xf32>
    tpu.vector_store %arg8[%c0_25, %c0_26], %41 {strides = array<i32>} : memref<2x16xf32, #tpu.memory_space<vmem>>, vector<2x16xf32>,
    return
  }
  func.func @transform_0(%arg0: i32) -> (i32, i32) {
    %c0_i32 = arith.constant 0 : i32
    %c0_i32_0 = arith.constant 0 : i32
    return %arg0, %c0_i32 : i32, i32
  }
  func.func @transform_1(%arg0: i32) -> (i32, i32) {
    %c0_i32 = arith.constant 0 : i32
    %c0_i32_0 = arith.constant 0 : i32
    %c0_i32_1 = arith.constant 0 : i32
    return %c0_i32, %c0_i32_0 : i32, i32
  }
  func.func @transform_2(%arg0: i32) -> (i32, i32) {
    %c0_i32 = arith.constant 0 : i32
    %c0_i32_0 = arith.constant 0 : i32
    %c0_i32_1 = arith.constant 0 : i32
    return %c0_i32, %c0_i32_0 : i32, i32
  }
  func.func @transform_3(%arg0: i32) -> (i32, i32, i32) {
    %c0_i32 = arith.constant 0 : i32
    %c0_i32_0 = arith.constant 0 : i32
    %c0_i32_1 = arith.constant 0 : i32
    %c0_i32_2 = arith.constant 0 : i32
    return %c0_i32, %c0_i32_0, %c0_i32_1 : i32, i32, i32
  }
  func.func @transform_4(%arg0: i32) -> (i32, i32) {
    %c0_i32 = arith.constant 0 : i32
    %c0_i32_0 = arith.constant 0 : i32
    %c0_i32_1 = arith.constant 0 : i32
    return %c0_i32, %c0_i32_0 : i32, i32
  }
  func.func @transform_5(%arg0: i32) -> (i32, i32) {
    %c0_i32 = arith.constant 0 : i32
    %c0_i32_0 = arith.constant 0 : i32
    %c0_i32_1 = arith.constant 0 : i32
    return %c0_i32, %c0_i32_0 : i32, i32
  }
  func.func @transform_6(%arg0: i32) -> i32 {
    %c0_i32 = arith.constant 0 : i32
    %c0_i32_0 = arith.constant 0 : i32
    return %c0_i32 : i32
  }
  func.func @transform_7(%arg0: i32) -> (i32, i32) {
    %c0_i32 = arith.constant 0 : i32
    %c0_i32_0 = arith.constant 0 : i32
    return %c0_i32, %arg0 : i32, i32
  }
}

</mosaic_0001>

<bundles_post_ra>
// kernel: twin_critics_forward.1
= control target key start
LH: loop header
LB: loop body
LE: loop exit
PB: predicated region body
PF: predicated region fallthrough
CT: control target
= control target key end

     0   :  { %12 = vsyncpa [#allocation3], 0  ;;  %s1249_s0 = inlined_call_operand.vmem [shape: bf16[16,24], index: 0, kind: input, shape index: {}]   ;;  %s1250_s1 = inlined_call_operand.hbm [shape: bf16[24,512], index: 1, kind: input, shape index: {}]   ;;  %s1251_s2 = inlined_call_operand.vmem [shape: f32[1,512], index: 2, kind: input, shape index: {}]   ;;  %s1252_s3 = inlined_call_operand.hbm [shape: bf16[2,256,256], index: 3, kind: input, shape index: {}]   ;;  %s1253_s4 = inlined_call_operand.vmem [shape: f32[2,256], index: 4, kind: input, shape index: {}]   ;;  %s1254_s5 = inlined_call_operand.vmem [shape: bf16[2,256], index: 5, kind: input, shape index: {}]   ;;  %s1255_s6 = inlined_call_operand.vmem [shape: f32[2], index: 6, kind: input, shape index: {}]   ;;  %s1256_s7 = inlined_call_operand.vmem [shape: f32[2,16], index: 7, kind: output, shape index: {}]  }
   0x1   :  { %13 = vsyncpa [#allocation6], 0 }
   0x2   :  { %14 = vsyncpa [#allocation4], 0  ;;  %s1142_s24 = smov [#allocation2]  }
   0x3   :  { %s22_s25 = sshll.u32 %s1142_s24, 4  ;;  %s23_s25 = int_to_ptr.vmem [resolvable:$true] %s22_s25 }
   0x4   :  { %s1092_s26 = scalar_lea.vmem %s23_s25, 768  ;;  %p1097_p1 = scmp.lt.s32.totalorder %s23_s25, %s23_s25 }
   0x5   :  { %p1093_p0 = scmp.ne.s32.totalorder %s23_s25, %s1092_s26  ;;  %p1098_p2 = scmp.lt.s32.totalorder %s1092_s26, %s1092_s26 }
   0x7   :  { %p1099_p3 = por %p1098_p2, %p1097_p1 }
   0x9   :  { %p1100_p4 = pnand %p1099_p3, %p1093_p0 }
   0xb   :  { %1103 = shalt.err (!%p1100_p4)
}
   0xc   :  { %s1143_s27 = smov 256   ;;  %s1144_s28 = smov 16  }
   0xd   :  { %28 = dma.hbm_to_vmem [thread:$0]  %s1250_s1, 768, %s23_s25, [#allocation3], %s1143_s27, %s1143_s27, %s1144_s28  }
   0xe   :  { %s1145_s8 = smov [#allocation5]  }
   0xf   :  { %s36_s9 = sshll.u32 %s1145_s8, 4  ;;  %s37_s9 = int_to_ptr.vmem [resolvable:$true] %s36_s9 }
  0x10   :  { %s1112_s10 = scalar_lea.vmem %s37_s9, 8192  ;;  %p1117_p6 = scmp.lt.s32.totalorder %s37_s9, %s37_s9 }
  0x11   :  { %p1113_p5 = scmp.ne.s32.totalorder %s37_s9, %s1112_s10  ;;  %p1118_p7 = scmp.lt.s32.totalorder %s1112_s10, %s1112_s10 }
  0x13   :  { %p1119_p8 = por %p1118_p7, %p1117_p6 }
  0x15   :  { %p1120_p9 = pnand %p1119_p8, %p1113_p5 }
  0x17   :  { %1123 = shalt.err (!%p1120_p9)
}
  0x18   :  { %s1146_s11 = smov 128   ;;  %s1147_s12 = smov 8  }
  0x19   :  { %42 = dma.hbm_to_vmem [thread:$0]  %s1252_s3, 8192, %s37_s9, [#allocation6], %s1146_s11, %s1146_s11, %s1147_s12  }
  0x1a   :  { %s53_s1 = sshll.u32 %s1255_s6, 4  ;;  %s54_s1 = int_to_ptr.vmem [resolvable:$true] %s53_s1 }
  0x1b   :  { %s1124_s17 = scalar_lea.vmem %s54_s1, 16  ;;  %p1129_p11 = scmp.lt.s32.totalorder %s54_s1, %s54_s1 }
  0x1c   :  { %p1125_p10 = scmp.ne.s32.totalorder %s54_s1, %s1124_s17  ;;  %p1130_p12 = scmp.lt.s32.totalorder %s1124_s17, %s1124_s17 }
  0x1e   :  { %p1131_p13 = por %p1130_p12, %p1129_p11 }
  0x20   :  { %p1132_p0 = pnand %p1131_p13, %p1125_p10 }
  0x22   :  { %1135 = shalt.err (!%p1132_p0)
}
  0x23   :  { %s1148_s18 = smov [#allocation7]  }
  0x24   :  { %56 = dma.vmem_to_smem %s54_s1, 16, %s1148_s18, [#allocation4]  }
  0x25   :  { %1136 = dma.done.wait [#allocation3], 768  }
  0x26   :  { %1137 = vsyncadd [#allocation3], 4294966528 }
  0x27   :  { %1138 = dma.done.wait [#allocation6], 8192  }
  0x28   :  { %1139 = vsyncadd [#allocation6], 4294959104 }
  0x29   :  { %1140 = dma.done.wait [#allocation4], 16  }
  0x2a   :  { %1141 = vsyncadd [#allocation4], 4294967280 }
  0x2b   :  { %66 = sfence }
  0x2c   :  { %v74_v0 = vld [vmem:[#allocation2 + $0x20] sm:$0xff]  ;;  %vm137_vm0 = vcmask 1043456   ;;  %v1149_v4 = vmov 0   ;;  %vm133_vm1 = vcmask 195584   ;;  %v988_v10 = vld [vmem:[#allocation5 + $0x64] ss:$8 sps:$4 sm:$0xff]   ;;  %v78_v46 = vlaneseq }
  0x2d   :  { %v894_v1 = vcombine.high %v74_v0, %v74_v0  ;;  %v893_v2 = vcombine.low %v74_v0, %v74_v0  ;;  %v979_v3 = vld [vmem:[#allocation2 + $0x4] ss:$16 sps:$4 sm:$0xff]   ;;  %182 = vmatprep.mubr.bf16.mxu0 %v1149_v4  ;;  %225 = vmatprep.mubr.bf16.mxu1 %v1149_v4  ;;  %v981_v6 = vld [vmem:[#allocation2] ss:$16 sps:$4 sm:$0xff]   ;;  %v75_v40 = vld [vmem:[#allocation2 + $0x28] sm:$0xff]  ;;  %s500_s24 = sld [smem:[#allocation7]] }
  0x2e   :  { %v985_v7 = vld [vmem:[#allocation5 + $0x74] ss:$8 sps:$4 sm:$0xff]   ;;  %v983_v9 = vld [vmem:[#allocation5 + $0x70] ss:$8 sps:$4 sm:$0xff]   ;;  %v986_v11 = vld [vmem:[#allocation5 + $0x60] ss:$8 sps:$4 sm:$0xff]   ;;  %v896_v41 = vcombine.high %v75_v40, %v75_v40  ;;  %v895_v42 = vcombine.low %v75_v40, %v75_v40 }
  0x2f   :  { %897 = vmatprep.subr.msk.bf16.mxu0 %vm137_vm0, %v894_v1  ;;  %v139_v5 = vsel %vm137_vm0, %v893_v2, 0  ;;  %v1205_v8 = vld [vmem:[%s1249_s0] sm:$0xff]   ;;  %v994_v14 = vld [vmem:[#allocation5 + $0x44] ss:$8 sps:$4 sm:$0xff]   ;;  %v992_v15 = vld [vmem:[#allocation5 + $0x40] ss:$8 sps:$4 sm:$0xff]  }
  0x30   :  { %163 = vmatpush1.bf16.msra.mxu0 %v139_v5  ;;  %v991_v12 = vld [vmem:[#allocation5 + $0x54] ss:$8 sps:$4 sm:$0xff]   ;;  %v989_v13 = vld [vmem:[#allocation5 + $0x50] ss:$8 sps:$4 sm:$0xff]   ;;  %v1000_v18 = vld [vmem:[#allocation5 + $0x24] ss:$8 sps:$4 sm:$0xff]   ;;  %899 = vmatprep.subr.msk.bf16.mxu1 %vm137_vm0, %v896_v41 }
  0x31   :  { %164 = vmatprep.subr.bf16.mxu0 %v979_v3  ;;  %v997_v16 = vld [vmem:[#allocation5 + $0x34] ss:$8 sps:$4 sm:$0xff]   ;;  %v995_v17 = vld [vmem:[#allocation5 + $0x30] ss:$8 sps:$4 sm:$0xff]   ;;  %v998_v19 = vld [vmem:[#allocation5 + $0x20] ss:$8 sps:$4 sm:$0xff]  }
  0x32   :  { %v1003_v20 = vld [vmem:[#allocation5 + $0x14] ss:$8 sps:$4 sm:$0xff]   ;;  %v1001_v21 = vld [vmem:[#allocation5 + $0x10] ss:$8 sps:$4 sm:$0xff]   ;;  %v1006_v22 = vld [vmem:[#allocation5 + $0x4] ss:$8 sps:$4 sm:$0xff]  }
  0x33   :  { %v1004_v23 = vld [vmem:[#allocation5] ss:$8 sps:$4 sm:$0xff]   ;;  %v1009_v24 = vld [vmem:[#allocation5 + $0xf4] ss:$8 sps:$4 sm:$0xff]   ;;  %v1007_v25 = vld [vmem:[#allocation5 + $0xf0] ss:$8 sps:$4 sm:$0xff]  }
  0x34   :  { %165 = vmatpush1.bf16.msra.mxu0 %v981_v6  ;;  %v1012_v26 = vld [vmem:[#allocation5 + $0xe4] ss:$8 sps:$4 sm:$0xff]   ;;  %v1010_v27 = vld [vmem:[#allocation5 + $0xe0] ss:$8 sps:$4 sm:$0xff]   ;;  %v1015_v28 = vld [vmem:[#allocation5 + $0xd4] ss:$8 sps:$4 sm:$0xff]  }
  0x35   :  { %451 = vmatprep.subr.bf16.mxu0 %v985_v7  ;;  %v1013_v29 = vld [vmem:[#allocation5 + $0xd0] ss:$8 sps:$4 sm:$0xff]   ;;  %v1018_v30 = vld [vmem:[#allocation5 + $0xc4] ss:$8 sps:$4 sm:$0xff]   ;;  %v1016_v31 = vld [vmem:[#allocation5 + $0xc0] ss:$8 sps:$4 sm:$0xff]  }
  0x36   :  { %v1021_v32 = vld [vmem:[#allocation5 + $0xb4] ss:$8 sps:$4 sm:$0xff]   ;;  %v1019_v33 = vld [vmem:[#allocation5 + $0xb0] ss:$8 sps:$4 sm:$0xff]   ;;  %v1024_v34 = vld [vmem:[#allocation5 + $0xa4] ss:$8 sps:$4 sm:$0xff]  }
  0x37   :  { %898 = vmatmul.mubr.msk.bf16.vlgmr.msra.gmra.mxu0 %vm133_vm1, %v1205_v8  ;;  %v1022_v35 = vld [vmem:[#allocation5 + $0xa0] ss:$8 sps:$4 sm:$0xff]   ;;  %v1027_v36 = vld [vmem:[#allocation5 + $0x94] ss:$8 sps:$4 sm:$0xff]   ;;  %v1025_v37 = vld [vmem:[#allocation5 + $0x90] ss:$8 sps:$4 sm:$0xff]  }
  0x38   :  { %452 = vmatpush1.bf16.msra.mxu0 %v983_v9  ;;  %v1030_v38 = vld [vmem:[#allocation5 + $0x84] ss:$8 sps:$4 sm:$0xff]   ;;  %v1028_v39 = vld [vmem:[#allocation5 + $0x80] ss:$8 sps:$4 sm:$0xff]   ;;  %v145_v44 = vsel %vm137_vm0, %v895_v42, 0  ;;  %v79_v47 = vshrl.u32 %v78_v46, 7 }
  0x39   :  { %453 = vmatprep.subr.bf16.mxu0 %v988_v10  ;;  %v1033_v43 = vld [vmem:[#allocation2 + $0xc] ss:$16 sps:$4 sm:$0xff]   ;;  %206 = vmatpush1.bf16.msra.mxu1 %v145_v44  ;;  %v1035_v45 = vld [vmem:[#allocation2 + $0x8] ss:$16 sps:$4 sm:$0xff]   ;;  %v76_v50 = vld [vmem:[%s1251_s2] sm:$0xf] }
  0x3a   :  { %207 = vmatprep.subr.bf16.mxu1 %v1033_v43  ;;  %v1213_v48 = vsub.s32 1, %v79_v47  ;;  %v1215_v49 = vsub.s32 0, %v79_v47  ;;  %v1150_v3 = vmov 1966171168   ;;  %v1038_v42 = vld [vmem:[#allocation5 + $0x174] ss:$8 sps:$4 sm:$0xff]  }
  0x3b   :  { %v512_v4 = vunpack.c.l.s4 %v1150_v3  ;;  %v933_v5 = vld.sshfl [vmem:[%s1254_s5] sm:$0x11 pattern:$0x75316420]  ;;  %v1063_v3 = vld [vmem:[#allocation5 + $0x1e0] ss:$8 sps:$4 sm:$0xff]  }
  0x3c   :  { %454 = vmatpush1.bf16.msra.mxu0 %v986_v11  ;;  %v85_v52 = vrot.slane %v76_v50, %v1213_v48  ;;  %v81_v53 = vrot.slane %v76_v50, %v1215_v49  ;;  %v510_v7 = vcombine.high %v933_v5, %v933_v5  ;;  %v88_v11 = vsub.s32 2, %v79_v47  ;;  %v1036_v46 = vld [vmem:[#allocation5 + $0x170] ss:$8 sps:$4 sm:$0xff]  }
  0x3d   :  { %455 = vmatprep.subr.bf16.mxu0 %v991_v12  ;;  %208 = vmatpush1.bf16.msra.mxu1 %v1035_v45  ;;  %v513_v6 = vunpack.c.0.s8 %v512_v4  ;;  %v1068_v4 = vld [vmem:[#allocation5 + $0x1d4] ss:$8 sps:$4 sm:$0xff]   ;;  %vm877_vm2 = vcmask 1040384   ;;  %vm879_vm3 = vcmask 123904  }
  0x40   :  { %456 = vmatpush1.bf16.msra.mxu0 %v989_v13  ;;  %900 = vmatmul.mubr.msk.bf16.vlgmr.msra.gmra.mxu1 %vm133_vm1, %v1205_v8  ;;  %v516_v8 = vsub.s32 %v513_v6, %v79_v47  ;;  %v89_v13 = vrot.slane %v76_v50, %v88_v11  ;;  %v1071_v6 = vld [vmem:[#allocation5 + $0x1c4] ss:$8 sps:$4 sm:$0xff]   ;;  %v1072_v11 = vld [vmem:[#allocation5 + $0x1b0] ss:$8 sps:$4 sm:$0xff]  }
  0x41   :  { %457 = vmatprep.subr.bf16.mxu0 %v994_v14 }
  0x42   :  { %v1225_v9 = vrot.slane %v510_v7, %v516_v8  ;;  %v1227_v10 = vrot.slane %v933_v5, %v516_v8  ;;  %v1066_v5 = vld [vmem:[#allocation5 + $0x1d0] ss:$8 sps:$4 sm:$0xff]   ;;  %v1069_v7 = vld [vmem:[#allocation5 + $0x1c0] ss:$8 sps:$4 sm:$0xff]   ;;  %v1074_v8 = vld [vmem:[#allocation5 + $0x1b4] ss:$8 sps:$4 sm:$0xff]  }
  0x44   :  { %458 = vmatpush1.bf16.msra.mxu0 %v992_v15  ;;  %559 = vmatprep.mubr.bf16.mxu1 %v1225_v9 }
  0x45   :  { %459 = vmatprep.subr.bf16.mxu0 %v997_v16 }
  0x48   :  { %460 = vmatpush1.bf16.msra.mxu0 %v995_v17 }
  0x49   :  { %461 = vmatprep.subr.bf16.mxu0 %v1000_v18 }
  0x4c   :  { %462 = vmatpush1.bf16.msra.mxu0 %v998_v19 }
  0x4d   :  { %463 = vmatprep.subr.bf16.mxu0 %v1003_v20 }
  0x50   :  { %464 = vmatpush1.bf16.msra.mxu0 %v1001_v21  ;;  %v279_v21 = vld [vmem:[%s1253_s4] ss:$2 sm:$0x3] }
  0x51   :  { %465 = vmatprep.subr.bf16.mxu0 %v1006_v22 }
  0x54   :  { %466 = vmatpush1.bf16.msra.mxu0 %v1004_v23  ;;  %v288_v23 = vrot.slane %v279_v21, %v1213_v48 }
  0x55   :  { %467 = vmatprep.subr.bf16.mxu0 %v1009_v24  ;;  %v284_v24 = vrot.slane %v279_v21, %v1215_v49 }
  0x58   :  { %468 = vmatpush2.bf16.msra.mxu0 %v1007_v25 }
  0x59   :  { %469 = vmatprep.subr.bf16.mxu0 %v1012_v26  ;;  %v92_v26 = vsub.s32 3, %v79_v47 }
  0x5c   :  { %470 = vmatpush2.bf16.msra.mxu0 %v1010_v27 }
  0x5d   :  { %471 = vmatprep.subr.bf16.mxu0 %v1015_v28 }
  0x60   :  { %472 = vmatpush2.bf16.msra.mxu0 %v1013_v29 }
  0x61   :  { %473 = vmatprep.subr.bf16.mxu0 %v1018_v30 }
  0x64   :  { %474 = vmatpush2.bf16.msra.mxu0 %v1016_v31 }
  0x65   :  { %475 = vmatprep.subr.bf16.mxu0 %v1021_v32  ;;  %v93_v32 = vrot.slane %v76_v50, %v92_v26  ;;  %v1039_v50 = vld [vmem:[#allocation5 + $0x160] ss:$8 sps:$4 sm:$0xff]  }
  0x68   :  { %476 = vmatpush2.bf16.msra.mxu0 %v1019_v33 }
  0x69   :  { %477 = vmatprep.subr.bf16.mxu0 %v1024_v34 }
  0x6c   :  { %478 = vmatpush2.bf16.msra.mxu0 %v1022_v35 }
  0x6d   :  { %479 = vmatprep.subr.bf16.mxu0 %v1027_v36 }
  0x70   :  { %480 = vmatpush2.bf16.msra.mxu0 %v1025_v37 }
  0x71   :  { %481 = vmatprep.subr.bf16.mxu0 %v1030_v38 }
  0x74   :  { %482 = vmatpush2.bf16.msra.mxu0 %v1028_v39 }
  0xf7   :  { %v184_v51 = vpop.f32.mrf.mxu0 }
  0xf8   :  { %v185_v58 = vadd.f32 %v184_v51, %v81_v53  ;;  %v1041_v51 = vld [vmem:[#allocation5 + $0x164] ss:$8 sps:$4 sm:$0xff]  }
  0xf9   :  { %v186_v54 = vpop.f32.mrf.mxu0 }
  0xfa   :  { %v187_v56 = vadd.f32 %v186_v54, %v85_v52  ;;  %v236_v0 = vmax.f32 %v185_v58, 0.0  ;;  %v1047_v54 = vld [vmem:[#allocation5 + $0x144] ss:$8 sps:$4 sm:$0xff]  }
  0xfb   :  { %v188_v55 = vpop.f32.mrf.mxu0  ;;  %v1053_v58 = vld [vmem:[#allocation5 + $0x124] ss:$8 sps:$4 sm:$0xff]  }
  0xfc   :  { %v189_v57 = vadd.f32 %v188_v55, %v81_v53  ;;  %v237_v62 = vmax.f32 %v187_v56, 0.0  ;;  %v1042_v53 = vld [vmem:[#allocation5 + $0x150] ss:$8 sps:$4 sm:$0xff]   ;;  %v1045_v55 = vld [vmem:[#allocation5 + $0x140] ss:$8 sps:$4 sm:$0xff]  }
  0xfd   :  { %v190_v59 = vpop.f32.mrf.mxu0  ;;  %v1050_v56 = vld [vmem:[#allocation5 + $0x134] ss:$8 sps:$4 sm:$0xff]  }
  0xfe   :  { %v191_v60 = vadd.f32 %v190_v59, %v85_v52  ;;  %v240_v61 = vmax.f32 %v189_v57, 0.0  ;;  %v1044_v52 = vld [vmem:[#allocation5 + $0x154] ss:$8 sps:$4 sm:$0xff]   ;;  %v1048_v57 = vld [vmem:[#allocation5 + $0x130] ss:$8 sps:$4 sm:$0xff]  }
  0xff   :  { %v1051_v59 = vld [vmem:[#allocation5 + $0x120] ss:$8 sps:$4 sm:$0xff]  }
 0x100   :  { %v241_v63 = vmax.f32 %v191_v60, 0.0  ;;  %v245_v2 = vpack.c.bf16 %v240_v61, %v236_v0  ;;  %v227_v12 = vpop.f32.mrf.mxu1  ;;  %v1056_v60 = vld [vmem:[#allocation5 + $0x114] ss:$8 sps:$4 sm:$0xff]   ;;  %v1054_v61 = vld [vmem:[#allocation5 + $0x110] ss:$8 sps:$4 sm:$0xff]  }
 0x101   :  { %v228_v14 = vadd.f32 %v227_v12, %v89_v13  ;;  %v1062_v0 = vld [vmem:[#allocation5 + $0x1f4] ss:$8 sps:$4 sm:$0xff]   ;;  %v1077_v12 = vld [vmem:[#allocation5 + $0x1a4] ss:$8 sps:$4 sm:$0xff]  }
 0x102   :  { %v246_v1 = vpack.c.bf16 %v241_v63, %v237_v62  ;;  %v229_v15 = vpop.f32.mrf.mxu1  ;;  %v1059_v62 = vld [vmem:[#allocation5 + $0x104] ss:$8 sps:$4 sm:$0xff]   ;;  %v1057_v63 = vld [vmem:[#allocation5 + $0x100] ss:$8 sps:$4 sm:$0xff]  }
 0x103   :  { %v238_v17 = vmax.f32 %v228_v14, 0.0  ;;  %v230_v39 = vadd.f32 %v229_v15, %v93_v32  ;;  %v1080_v14 = vld [vmem:[#allocation5 + $0x194] ss:$8 sps:$4 sm:$0xff]   ;;  %v1078_v15 = vld [vmem:[#allocation5 + $0x190] ss:$8 sps:$4 sm:$0xff]  }
 0x104   :  { %483 = vmatprep.mubr.bf16.mxu0 %v246_v1  ;;  %v231_v16 = vpop.f32.mrf.mxu1  ;;  %v1060_v1 = vld [vmem:[#allocation5 + $0x1f0] ss:$8 sps:$4 sm:$0xff]  }
 0x105   :  { %484 = vmatmul.mubr.bf16.vlgmr.msra.gmra.mxu0 %v245_v2  ;;  %v232_v18 = vadd.f32 %v231_v16, %v89_v13  ;;  %v239_v44 = vmax.f32 %v230_v39, 0.0  ;;  %v1065_v2 = vld [vmem:[#allocation5 + $0x1e4] ss:$8 sps:$4 sm:$0xff]   ;;  %v1075_v13 = vld [vmem:[#allocation5 + $0x1a0] ss:$8 sps:$4 sm:$0xff]   ;;  %v827_v39 = vshrl.u32 %v1227_v10, 16 }
 0x106   :  { %v233_v34 = vpop.f32.mrf.mxu1  ;;  %v1083_v16 = vld [vmem:[#allocation5 + $0x184] ss:$8 sps:$4 sm:$0xff]  }
 0x107   :  { %v242_v19 = vmax.f32 %v232_v18, 0.0  ;;  %v234_v40 = vadd.f32 %v233_v34, %v93_v32  ;;  %v830_v18 = vshrl.u32 %v1225_v9, 16 }
 0x109   :  { %v1230_v20 = vpack.c.bf16 %v242_v19, %v238_v17  ;;  %v243_v45 = vmax.f32 %v234_v40, 0.0  ;;  %v1081_v17 = vld [vmem:[#allocation5 + $0x180] ss:$8 sps:$4 sm:$0xff]   ;;  %866 = vmatprep.mubr.bf16.mxu0 %v830_v18 }
 0x10b   :  { %v568_v47 = vpack.c.bf16 %v243_v45, %v239_v44 }
 0x1c5   :  { %v485_v22 = vpop.f32.mrf.mxu0 }
 0x1c6   :  { %v486_v30 = vadd.f32 %v485_v22, %v284_v24 }
 0x1c7   :  { %v487_v25 = vpop.f32.mrf.mxu0 }
 0x1c8   :  { %v488_v28 = vadd.f32 %v487_v25, %v288_v23  ;;  %v494_v38 = vmax.f32 %v486_v30, 0.0 }
 0x1c9   :  { %v489_v27 = vpop.f32.mrf.mxu0 }
 0x1ca   :  { %v490_v29 = vadd.f32 %v489_v27, %v284_v24  ;;  %v495_v36 = vmax.f32 %v488_v28, 0.0  ;;  %v934_v24 = vld [vmem:[%s1253_s4 + $0x1] ss:$2 sm:$0x3]  ;;  %s967_s4 = sld [smem:[#allocation7 + $0x1]] }
 0x1cb   :  { %v491_v31 = vpop.f32.mrf.mxu0  ;;  %v612_v26 = vrot.slane %v934_v24, %v1213_v48  ;;  %v608_v27 = vrot.slane %v934_v24, %v1215_v49  ;;  %v501_v49 = vstv %s500_s24 }
 0x1cc   :  { %v492_v33 = vadd.f32 %v491_v31, %v288_v23  ;;  %v496_v35 = vmax.f32 %v490_v29, 0.0 }
 0x1ce   :  { %v497_v37 = vmax.f32 %v492_v33, 0.0  ;;  %v498_v43 = vpack.c.bf16 %v496_v35, %v494_v38 }
 0x1d0   :  { %v499_v41 = vpack.c.bf16 %v497_v37, %v495_v36  ;;  %v825_v48 = vstv %s967_s4 }
 0x1d2   :  { %541 = vmatprep.subr.bf16.mxu1 %v499_v41 }
 0x1d3   :  { %542 = vmatpush1.bf16.xpose.msra.mxu1 %v498_v43 }
 0x1d4   :  { %775 = vmatprep.subr.bf16.mxu1 %v1038_v42 }
 0x1da   :  { %560 = vmatmul.mubr.bf16.vlgmr.msra.gmra.mxu1 %v1227_v10 }
 0x1db   :  { %776 = vmatpush1.bf16.msra.mxu1 %v1036_v46  ;;  %807 = vmatprep.mubr.bf16.mxu1 %v568_v47 }
 0x1dc   :  { %777 = vmatprep.subr.bf16.mxu1 %v1041_v51 }
 0x1df   :  { %778 = vmatpush1.bf16.msra.mxu1 %v1039_v50 }
 0x1e0   :  { %779 = vmatprep.subr.bf16.mxu1 %v1044_v52 }
 0x1e3   :  { %780 = vmatpush1.bf16.msra.mxu1 %v1042_v53 }
 0x1e4   :  { %781 = vmatprep.subr.bf16.mxu1 %v1047_v54 }
 0x1e7   :  { %782 = vmatpush1.bf16.msra.mxu1 %v1045_v55 }
 0x1e8   :  { %783 = vmatprep.subr.bf16.mxu1 %v1050_v56 }
 0x1eb   :  { %784 = vmatpush1.bf16.msra.mxu1 %v1048_v57 }
 0x1ec   :  { %785 = vmatprep.subr.bf16.mxu1 %v1053_v58 }
 0x1ef   :  { %786 = vmatpush1.bf16.msra.mxu1 %v1051_v59 }
 0x1f0   :  { %787 = vmatprep.subr.bf16.mxu1 %v1056_v60 }
 0x1f3   :  { %788 = vmatpush1.bf16.msra.mxu1 %v1054_v61 }
 0x1f4   :  { %789 = vmatprep.subr.bf16.mxu1 %v1059_v62 }
 0x1f7   :  { %790 = vmatpush1.bf16.msra.mxu1 %v1057_v63 }
 0x1f8   :  { %791 = vmatprep.subr.bf16.mxu1 %v1062_v0 }
 0x1fb   :  { %792 = vmatpush2.bf16.msra.mxu1 %v1060_v1 }
 0x1fc   :  { %793 = vmatprep.subr.bf16.mxu1 %v1065_v2 }
 0x1ff   :  { %794 = vmatpush2.bf16.msra.mxu1 %v1063_v3 }
 0x200   :  { %795 = vmatprep.subr.bf16.mxu1 %v1068_v4 }
 0x203   :  { %796 = vmatpush2.bf16.msra.mxu1 %v1066_v5 }
 0x204   :  { %797 = vmatprep.subr.bf16.mxu1 %v1071_v6 }
 0x207   :  { %798 = vmatpush2.bf16.msra.mxu1 %v1069_v7 }
 0x208   :  { %799 = vmatprep.subr.bf16.mxu1 %v1074_v8 }
 0x20b   :  { %800 = vmatpush2.bf16.msra.mxu1 %v1072_v11 }
 0x20c   :  { %801 = vmatprep.subr.bf16.mxu1 %v1077_v12 }
 0x20f   :  { %802 = vmatpush2.bf16.msra.mxu1 %v1075_v13 }
 0x210   :  { %803 = vmatprep.subr.bf16.mxu1 %v1080_v14 }
 0x213   :  { %804 = vmatpush2.bf16.msra.mxu1 %v1078_v15 }
 0x214   :  { %805 = vmatprep.subr.bf16.mxu1 %v1083_v16 }
 0x217   :  { %806 = vmatpush2.bf16.msra.mxu1 %v1081_v17 }
 0x21a   :  { %808 = vmatmul.mubr.bf16.vlgmr.msra.gmra.mxu1 %v1230_v20 }
 0x29a   :  { %v561_v19 = vpop.f32.mrf.mxu1 }
 0x29b   :  { %v562_v43 = vadd.f32 %v561_v19, %v501_v49 }
 0x29c   :  { %v563_v21 = vpop.f32.mrf.mxu1 }
 0x29e   :  { %v564_v22 = vpop.f32.mrf.mxu1 }
 0x2a0   :  { %v565_v23 = vpop.f32.mrf.mxu1 }
 0x2da   :  { %v809_v25 = vpop.f32.mrf.mxu1 }
 0x2db   :  { %v810_v31 = vadd.f32 %v809_v25, %v608_v27 }
 0x2dc   :  { %v811_v28 = vpop.f32.mrf.mxu1 }
 0x2dd   :  { %v812_v30 = vadd.f32 %v811_v28, %v612_v26  ;;  %v818_v36 = vmax.f32 %v810_v31, 0.0 }
 0x2de   :  { %v813_v29 = vpop.f32.mrf.mxu1 }
 0x2df   :  { %v814_v20 = vadd.f32 %v813_v29, %v608_v27  ;;  %v819_v34 = vmax.f32 %v812_v30, 0.0 }
 0x2e0   :  { %v815_v9 = vpop.f32.mrf.mxu1 }
 0x2e1   :  { %v816_v32 = vadd.f32 %v815_v9, %v612_v26  ;;  %v820_v33 = vmax.f32 %v814_v20, 0.0 }
 0x2e3   :  { %v821_v35 = vmax.f32 %v816_v32, 0.0  ;;  %v822_v38 = vpack.c.bf16 %v820_v33, %v818_v36 }
 0x2e5   :  { %v823_v37 = vpack.c.bf16 %v821_v35, %v819_v34 }
 0x2e7   :  { %848 = vmatprep.subr.bf16.mxu0 %v823_v37 }
 0x2e8   :  { %849 = vmatpush1.bf16.xpose.msra.mxu0 %v822_v38 }
 0x2ef   :  { %867 = vmatmul.mubr.bf16.vlgmr.msra.gmra.mxu0 %v827_v39 }
 0x3af   :  { %v868_v40 = vpop.f32.mrf.mxu0 }
 0x3b0   :  { %v869_v41 = vadd.f32 %v868_v40, %v825_v48 }
 0x3b1   :  { %v870_v42 = vpop.f32.mrf.mxu0 }
 0x3b2   :  { %v875_v44 = vrot.slane %v869_v41, 7 }
 0x3b3   :  { %v871_v45 = vpop.f32.mrf.mxu0 }
 0x3b4   :  { %v878_v46 = vsel %vm877_vm2, %v562_v43, %v875_v44 }
 0x3b5   :  { %880 = vst.msk [vmem:[%s1256_s7] sm:$0x3] %vm879_vm3, %v878_v46  ;;  %v872_v47 = vpop.f32.mrf.mxu0 }
 0x3b6   :  { %885 = vsyncpa [#allocation3], 1 }
 0x3b7   :  { %886 = vsyncpa [#allocation6], 1 }
 0x3b8   :  { %887 = vsyncpa [#allocation4], 1 }

</bundles_post_ra>
